<compile_context>
chip_gen: v7x
topology: tpu7x:2x2x1
jax: 0.10.0
libtpu: 0.0.40
codegen_flags: <defaults>
</compile_context>

<pallas_src>
import functools
import math

import jax
import jax.numpy as jnp
from jax import lax
from jax.experimental import pallas as pl
from jax.experimental.pallas import tpu as pltpu

_NEG_INF = -1e30


def _round_up(x, m):
    return ((x + m - 1) // m) * m


def _pick_tile(dim, candidates):
    for c in candidates:
        if c <= dim and dim % c == 0:
            return c
    return dim


def _pad2d(x, rows, cols):
    r, c = x.shape
    if r == rows and c == cols:
        return x
    return jnp.pad(x, ((0, rows - r), (0, cols - c)))


@functools.lru_cache(maxsize=1)
def _vmem_limit_bytes():
    # Generation-aware VMEM budget: ~3/4 of physical capacity, capped at
    # 100 MiB (-> ~96 MiB on v5e/v6e with 128 MiB, ~48 MiB on v7x with 64 MiB).
    try:
        cap = int(pltpu.get_tpu_info().vmem_capacity_bytes)
        return int(min(cap * 3 // 4, 100 * 1024 * 1024))
    except Exception:
        return 48 * 1024 * 1024  # safe on every generation (<= 64 MiB physical)


def _cparams(dims):
    return pltpu.CompilerParams(dimension_semantics=dims,
                                vmem_limit_bytes=_vmem_limit_bytes())


# -----------------------------------------------------------------------------
# Pallas kernel 1: tiled linear layer  y = relu?(x @ W + b)
#   grid = (M/tm, N/tn, K/tk); f32 accumulator in VMEM; bf16 MXU operands.
#   Rows padded to 128 so bf16 tiles are fully sublane-packed and tiles match
#   the MXU; tm = Mp (when it fits) so W is streamed from HBM only once.
# -----------------------------------------------------------------------------
def _linear_kernel(x_ref, w_ref, b_ref, o_ref, acc_ref, *, relu):
    @pl.when(pl.program_id(2) == 0)
    def _():
        acc_ref[...] = jnp.zeros_like(acc_ref)

    acc_ref[...] += jnp.dot(x_ref[...], w_ref[...],
                            preferred_element_type=jnp.float32)

    @pl.when(pl.program_id(2) == pl.num_programs(2) - 1)
    def _():
        y = acc_ref[...] + b_ref[...]
        if relu:
            y = jnp.maximum(y, 0.0)
        o_ref[...] = y.astype(o_ref.dtype)


def pallas_linear(x, w, b, relu=False, out_dtype=jnp.float32):
    M, K = x.shape
    K2, N = w.shape
    assert K == K2
    Mp, Kp, Np = _round_up(M, 128), _round_up(K, 128), _round_up(N, 128)
    # Cover all of Mp with one row tile when possible -> W streamed once.
    tm = Mp if Mp <= 512 else _pick_tile(Mp, (512, 256, 128))
    tk = _pick_tile(Kp, (512, 256, 128))
    tn = _pick_tile(Np, (256, 128))

    xp = _pad2d(x.astype(jnp.bfloat16), Mp, Kp)
    wp = _pad2d(w.astype(jnp.bfloat16), Kp, Np)
    bp = _pad2d(b.reshape(1, N).astype(jnp.float32), 1, Np)

    out = pl.pallas_call(
        functools.partial(_linear_kernel, relu=relu),
        out_shape=jax.ShapeDtypeStruct((Mp, Np), out_dtype),
        grid=(Mp // tm, Np // tn, Kp // tk),
        in_specs=[
            pl.BlockSpec((tm, tk), lambda i, j, k: (i, k)),
            pl.BlockSpec((tk, tn), lambda i, j, k: (k, j)),
            pl.BlockSpec((1, tn), lambda i, j, k: (0, j)),
        ],
        out_specs=pl.BlockSpec((tm, tn), lambda i, j, k: (i, j)),
        scratch_shapes=[pltpu.VMEM((tm, tn), jnp.float32)],
        compiler_params=_cparams(("parallel", "parallel", "arbitrary")),
    )(xp, wp, bp)
    return out[:M, :N]


# -----------------------------------------------------------------------------
# Pallas kernel 2: fused projector MLP  u = (relu(x @ W1 + b1)) @ W2 + b2
#   Projector weights are tiny; keep them VMEM-resident, avoid the HBM
#   round-trip of the hidden activation and extra kernel launches.
# -----------------------------------------------------------------------------
def _projector_kernel(x_ref, w1_ref, b1_ref, w2_ref, b2_ref, o_ref):
    h = jnp.dot(x_ref[...], w1_ref[...], preferred_element_type=jnp.float32)
    h = jnp.maximum(h + b1_ref[...], 0.0)
    o_ref[...] = (jnp.dot(h.astype(jnp.bfloat16), w2_ref[...],
                          preferred_element_type=jnp.float32) + b2_ref[...])


def pallas_projector(x, w1, b1, w2, b2):
    M, K = x.shape
    K1, H = w1.shape
    H2, N = w2.shape
    assert K == K1 and H == H2
    Mp = _round_up(M, 128)
    Kp, Hp, Np = _round_up(K, 128), _round_up(H, 128), _round_up(N, 128)

    # Fall back to two tiled linears if the projector weights are too large to
    # sit in VMEM as single blocks.
    if (Kp * Hp + Hp * Np) * 2 > 8 * 1024 * 1024:
        h = pallas_linear(x, w1, b1, relu=True, out_dtype=jnp.bfloat16)
        return pallas_linear(h, w2, b2, relu=False, out_dtype=jnp.float32)

    tm = Mp if Mp <= 512 else _pick_tile(Mp, (512, 256, 128))
    xp = _pad2d(x.astype(jnp.bfloat16), Mp, Kp)
    w1p = _pad2d(w1.astype(jnp.bfloat16), Kp, Hp)
    b1p = _pad2d(b1.reshape(1, H).astype(jnp.float32), 1, Hp)
    w2p = _pad2d(w2.astype(jnp.bfloat16), Hp, Np)
    b2p = _pad2d(b2.reshape(1, N).astype(jnp.float32), 1, Np)

    out = pl.pallas_call(
        _projector_kernel,
        out_shape=jax.ShapeDtypeStruct((Mp, Np), jnp.float32),
        grid=(Mp // tm,),
        in_specs=[
            pl.BlockSpec((tm, Kp), lambda i: (i, 0)),
            pl.BlockSpec((Kp, Hp), lambda i: (0, 0)),
            pl.BlockSpec((1, Hp), lambda i: (0, 0)),
            pl.BlockSpec((Hp, Np), lambda i: (0, 0)),
            pl.BlockSpec((1, Np), lambda i: (0, 0)),
        ],
        out_specs=pl.BlockSpec((tm, Np), lambda i: (i, 0)),
        compiler_params=_cparams(("parallel",)),
    )(xp, w1p, b1p, w2p, b2p)
    return out[:M, :N]


# -----------------------------------------------------------------------------
# Pallas kernel 3: Householder reflection of vMF samples + mean over samples
#   z  : (S, N, D)  raw samples around e1
#   u' : (N, D)     normalized Householder vector (e1 - mu)/||e1 - mu||
#   out: (Np, Dp)   mean_s ( z - 2 (z . u') u' )  (zero-padded rows/cols)
#   grid = (N tiles [parallel], sample blocks [arbitrary reduction]).
#   Samples are streamed in blocks of `sb` (>= 64 KiB DMAs, sb-x fewer grid
#   steps) and reduced with a small unrolled loop; padded samples are zero so
#   they contribute nothing to the sum.
# -----------------------------------------------------------------------------
def _householder_mean_kernel(z_ref, u_ref, o_ref, acc_ref, *, inv_s, sb):
    s = pl.program_id(1)

    @pl.when(s == 0)
    def _():
        acc_ref[...] = jnp.zeros_like(acc_ref)

    u = u_ref[...]                                       # (tn, Dp), resident
    total = jnp.zeros(acc_ref.shape, jnp.float32)
    for si in range(sb):                                 # small static unroll
        z = z_ref[si]                                    # (tn, Dp)
        proj = jnp.sum(z * u, axis=-1, keepdims=True)    # cross-lane reduce
        total = total + (z - (2.0 * proj) * u)
    acc_ref[...] += total

    @pl.when(s == pl.num_programs(1) - 1)
    def _():
        o_ref[...] = acc_ref[...] * inv_s


def pallas_householder_mean(z, u_prime):
    S, N, D = z.shape
    Np, Dp = _round_up(N, 128), _round_up(D, 128)
    tn = _pick_tile(Np, (256, 128))
    sb = min(S, 8)
    Sp = _round_up(S, sb)

    zp = jnp.pad(z.astype(jnp.float32),
                 ((0, Sp - S), (0, Np - N), (0, Dp - D)))
    up = _pad2d(u_prime.astype(jnp.float32), Np, Dp)

    out = pl.pallas_call(
        functools.partial(_householder_mean_kernel, inv_s=1.0 / S, sb=sb),
        out_shape=jax.ShapeDtypeStruct((Np, Dp), jnp.float32),
        grid=(Np // tn, Sp // sb),
        in_specs=[
            pl.BlockSpec((sb, tn, Dp), lambda n, s: (s, n, 0)),
            pl.BlockSpec((tn, Dp), lambda n, s: (n, 0)),
        ],
        out_specs=pl.BlockSpec((tn, Dp), lambda n, s: (n, 0)),
        scratch_shapes=[pltpu.VMEM((tn, Dp), jnp.float32)],
        compiler_params=_cparams(("parallel", "arbitrary")),
    )(zp, up)
    return out  # padded (Np, Dp); padded rows/cols are exactly zero


# -----------------------------------------------------------------------------
# Pallas kernel 4: MC-InfoNCE loss.
#   Reproduces the reference:
#     sim = z @ z.T ; neg = off-diagonal(sim) ; pos_i = <z_i, z_{(i+-B)}>
#     logits = [pos, neg] / temp ; loss = CE(logits, label=0), mean reduction.
#   grid (row tiles [parallel], col tiles [arbitrary]). z^T is pre-transposed
#   in the wrapper (MXU-friendly) and kept fully VMEM-resident for realistic
#   sizes, so the column axis collapses to a single pass; the positive logit is
#   computed once in the wrapper and passed as a resident (tr,1) block, leaving
#   only a masked online log-sum-exp in the inner loop. z stays f32 (tiny).
# -----------------------------------------------------------------------------
def _mcinfonce_loss_kernel(zr_ref, zt_ref, pos_ref, o_ref, m_ref, l_ref,
                           *, n_valid, inv_t, tr, tc):
    r = pl.program_id(0)
    c = pl.program_id(1)

    @pl.when(c == 0)
    def _():
        m_ref[...] = jnp.full_like(m_ref, _NEG_INF)
        l_ref[...] = jnp.zeros_like(l_ref)

    sim = jnp.dot(zr_ref[...], zt_ref[...],
                  preferred_element_type=jnp.float32)              # (tr, tc)
    row = r * tr + lax.broadcasted_iota(jnp.int32, (tr, 1), 0)
    col = c * tc + lax.broadcasted_iota(jnp.int32, (1, tc), 1)
    excluded = jnp.logical_or(row == col, col >= n_valid)          # diag + pad
    s = jnp.where(excluded, _NEG_INF, sim * inv_t)
    m_new = jnp.maximum(m_ref[...], jnp.max(s, axis=-1, keepdims=True))
    # exp(s - m_new) underflows to exactly 0 on excluded entries (m_new is
    # finite from the first column tile because n_valid >= 2), so no second
    # select is needed.
    l_ref[...] = (jnp.exp(m_ref[...] - m_new) * l_ref[...]
                  + jnp.sum(jnp.exp(s - m_new), axis=-1, keepdims=True))
    m_ref[...] = m_new

    @pl.when(c == pl.num_programs(1) - 1)
    def _():
        # cross-entropy with label 0 == pos column: logsumexp([pos, neg]) - pos
        pos_logit = pos_ref[...] * inv_t
        m_tot = jnp.maximum(m_ref[...], pos_logit)
        lse = m_tot + jnp.log(jnp.exp(pos_logit - m_tot)
                              + l_ref[...] * jnp.exp(m_ref[...] - m_tot))
        o_ref[...] = lse - pos_logit


def pallas_mcinfonce_loss(z_padded, pos, *, n_valid, temp):
    Np, Dp = z_padded.shape
    tr = _pick_tile(Np, (256, 128))
    # Keep the whole (Dp, Np) z^T VMEM-resident when small (collapses the LSE
    # streaming axis to one pass); otherwise stream large column tiles.
    if Np * Dp * 4 <= 8 * 1024 * 1024:
        tc = Np
    else:
        tc = _pick_tile(Np, (2048, 1024, 512, 256, 128))

    zt = jnp.transpose(z_padded)                        # (Dp, Np), dot-friendly
    pos_col = jnp.zeros((Np, 1), jnp.float32).at[:n_valid, 0].set(pos)

    per_row = pl.pallas_call(
        functools.partial(_mcinfonce_loss_kernel, n_valid=n_valid,
                          inv_t=1.0 / temp, tr=tr, tc=tc),
        out_shape=jax.ShapeDtypeStruct((Np, 1), jnp.float32),
        grid=(Np // tr, Np // tc),
        in_specs=[
            pl.BlockSpec((tr, Dp), lambda r, c: (r, 0)),
            pl.BlockSpec((Dp, tc), lambda r, c: (0, c)),
            pl.BlockSpec((tr, 1), lambda r, c: (r, 0)),
        ],
        out_specs=pl.BlockSpec((tr, 1), lambda r, c: (r, 0)),
        scratch_shapes=[pltpu.VMEM((tr, 1), jnp.float32)] * 2,
        compiler_params=_cparams(("parallel", "arbitrary")),
    )(z_padded, zt, pos_col)
    return jnp.mean(per_row[:n_valid, 0])


# -----------------------------------------------------------------------------
# von Mises-Fisher rsample (pre-Householder part) — plain JAX glue.
# Mirrors vonMisesFisher._sample_w / _while_w / _sample_v.
# -----------------------------------------------------------------------------
def vmf_presample(key, loc, scale, n_samples, k=20, etol=1e-14):
    N, D = loc.shape
    m = D
    S = n_samples

    quad = jnp.sqrt(4.0 * scale**2 + (m - 1) ** 2)
    b_true = (-2.0 * scale + quad) / (m - 1)
    b_approx = (m - 1) / (4.0 * scale)
    mix = jnp.clip(scale - 10.0, 0.0, 1.0)
    b = b_approx * mix + b_true * (1.0 - mix)
    a = (m - 1 + 2.0 * scale + quad) / 4.0
    d = 4.0 * a * b / (1.0 + b) - (m - 1) * math.log(m - 1)
    is_inf = jnp.isinf(scale)

    def rep(x):
        return jnp.tile(x[None, :], (S, 1)).reshape(-1, 1)

    b_r, a_r, d_r = rep(b), rep(a), rep(d)
    inf_r = rep(is_inf.astype(jnp.float32)) > 0.5
    M = b_r.shape[0]
    rows = jnp.arange(M)

    def cond(state):
        _, _, _, mask = state
        return jnp.any(mask)

    def body(state):
        key, w, e, mask = state
        key, k1, k2 = jax.random.split(key, 3)
        eps = jax.random.beta(k1, (m - 1) / 2.0, (m - 1) / 2.0,
                              (M, k)).astype(jnp.float32)
        u = jax.random.uniform(k2, (M, k), minval=etol, maxval=1.0 - etol,
                               dtype=jnp.float32)
        w_tmp = (1.0 - (1.0 + b_r) * eps) / (1.0 - (1.0 - b_r) * eps)
        t = 2.0 * a_r * b_r / (1.0 - (1.0 - b_r) * eps)
        accept = (m - 1.0) * jnp.log(t) - t + d_r > jnp.log(u)
        w_tmp = jnp.where(inf_r, 1.0, w_tmp)
        accept = jnp.logical_or(accept, inf_r)

        has = jnp.any(accept, axis=1, keepdims=True)        # (M, 1)
        idx = jnp.argmax(accept, axis=1)                    # first accepted
        w_sel = w_tmp[rows, idx][:, None]
        e_sel = eps[rows, idx][:, None]

        upd = jnp.logical_and(mask, has)
        w = jnp.where(upd, w_sel, w)
        e = jnp.where(upd, e_sel, e)
        mask = jnp.logical_and(mask, jnp.logical_not(has))
        return key, w, e, mask

    key, sub = jax.random.split(key)
    w0 = jnp.zeros((M, 1), jnp.float32)
    e0 = jnp.zeros((M, 1), jnp.float32)
    mask0 = jnp.ones((M, 1), dtype=bool)
    _, w, _, _ = lax.while_loop(cond, body, (sub, w0, e0, mask0))
    w = w.reshape(S, N)

    key, kv = jax.random.split(key)
    v = jax.random.normal(kv, (S, N, D), dtype=jnp.float32)[..., 1:]
    v = v / jnp.linalg.norm(v, axis=-1, keepdims=True)

    w_cos = jnp.sqrt(jnp.maximum(1.0 - w**2, etol))
    x = jnp.concatenate([w[..., None], w_cos[..., None] * v], axis=-1)  # (S,N,D)
    # TODO(synk): torch rsample re-samples recursively on NaN; skipped here.
    return x


# -----------------------------------------------------------------------------
# MCInfoNCE forward
# -----------------------------------------------------------------------------
def mc_infonce_forward(params, y1, y2, key, *, batch_size, n_samples, temp,
                       etol=1e-4):
    B = y1.shape[0]
    # Both views share the backbone/projector weights — run each layer once on
    # the concatenated batch (halves kernel launches and weight DMA).
    x = jnp.concatenate([y1.reshape(B, -1), y2.reshape(B, -1)], axis=0)

    r = pallas_linear(x, params["w_back"], params["b_back"], relu=True,
                      out_dtype=jnp.bfloat16)     # projector casts to bf16 anyway
    u_all = pallas_projector(r, params["w_p1"], params["b_p1"],
                             params["w_p2"], params["b_p2"])
    u1, u2 = u_all[:B], u_all[B:]

    # FullGatherLayer == identity on a single device.
    u1 = u1[:, :-1]
    u2 = u2[:, :-1]
    # NOTE: faithful to the torch code — kappa is the last column of the
    # *already-sliced* u (that column also stays part of the location).
    kappa1 = jnp.maximum(u1[:, -1], 0.0) + etol
    kappa2 = jnp.maximum(u2[:, -1], 0.0) + etol
    kappa = jnp.concatenate([kappa1, kappa2], axis=0)          # (2B,)

    u1 = u1 / jnp.maximum(jnp.linalg.norm(u1, axis=1, keepdims=True), 1e-12)
    u2 = u2 / jnp.maximum(jnp.linalg.norm(u2, axis=1, keepdims=True), 1e-12)
    u = jnp.concatenate([u1, u2], axis=0)                      # (2B, D)

    # vMF(loc=u, scale=kappa).rsample((n_samples,)) — pre-Householder samples
    z_raw = vmf_presample(key, u, kappa, n_samples, k=20)      # (S, 2B, D)

    # Householder vector u' = (e1 - mu)/||e1 - mu||
    e1 = jnp.zeros_like(u).at[:, 0].set(1.0)
    uh = e1 - u
    u_prime = uh / jnp.maximum(
        jnp.linalg.norm(uh, axis=-1, keepdims=True), 1e-14)

    # Pallas: Householder reflection + mean over MC samples (padded output)
    z_mean = pallas_householder_mean(z_raw, u_prime)           # (Np, Dp), f32

    # Positive logits computed once (outside the loss kernel's inner loop):
    #   pos_i = <z_i, z_{i+B}>, duplicated for both views (matches torch).
    n_valid = 2 * B
    zv = z_mean[:n_valid]
    pos = jnp.sum(zv[:batch_size] * zv[batch_size:], axis=-1)  # (B,)
    pos = jnp.concatenate([pos, pos], axis=0)                  # (2B,)

    # Pallas: masked similarity log-sum-exp + MC-InfoNCE cross-entropy loss
    loss = pallas_mcinfonce_loss(z_mean, pos, n_valid=n_valid, temp=temp)
    return loss


# -----------------------------------------------------------------------------
if __name__ == "__main__":
    key = jax.random.PRNGKey(0)

    # small shapes: batch=2 per view, 4x16x16 images, rep_dim=32, D=16 latents
    B, C, H, W = 2, 4, 16, 16
    rep_dim = 32
    proj_hidden = 32
    proj_out = 17          # -> 16-d location after dropping the last column
    n_samples = 20
    temp = 0.5

    in_dim = C * H * W
    (k_wb, k_w1, k_w2, k_y1, k_y2, k_smp) = jax.random.split(key, 6)

    params = {
        "w_back": jax.random.normal(k_wb, (in_dim, rep_dim), jnp.float32)
        * (1.0 / math.sqrt(in_dim)),
        "b_back": jnp.zeros((rep_dim,), jnp.float32),
        "w_p1": jax.random.normal(k_w1, (rep_dim, proj_hidden), jnp.float32)
        * (1.0 / math.sqrt(rep_dim)),
        "b_p1": jnp.zeros((proj_hidden,), jnp.float32),
        "w_p2": jax.random.normal(k_w2, (proj_hidden, proj_out), jnp.float32)
        * (1.0 / math.sqrt(proj_hidden)),
        "b_p2": jnp.zeros((proj_out,), jnp.float32),
    }

    y1 = jax.random.normal(k_y1, (B, C, H, W), jnp.float32)
    y2 = jax.random.normal(k_y2, (B, C, H, W), jnp.float32)

    loss = mc_infonce_forward(params, y1, y2, k_smp,
                              batch_size=B, n_samples=n_samples, temp=temp)
    jax.block_until_ready(loss)
    assert loss.shape == () and jnp.isfinite(loss)
    print("KERNEL_OK")
</pallas_src>

<mosaic_0001>
module attributes {stable_mosaic.version = 11 : i64} {
  func.func @_linear_kernel(%arg0: i32, %arg1: i32, %arg2: i32, %arg3: memref<128x512xbf16, #tpu.memory_space<vmem>>, %arg4: memref<512x128xbf16, #tpu.memory_space<vmem>>, %arg5: memref<1x128xf32, #tpu.memory_space<vmem>>, %arg6: memref<128x128xbf16, #tpu.memory_space<vmem>>, %arg7: memref<128x128xf32, #tpu.memory_space<vmem>>) attributes {dimension_semantics = [#tpu.dimension_semantics<parallel>, #tpu.dimension_semantics<parallel>, #tpu.dimension_semantics<arbitrary>], iteration_bounds = array<i64: 1, 1, 2>, scalar_prefetch = 0 : i64, scratch_operands = 1 : i64, tpu.core_type = #tpu.core_type<tc>, window_params = [{transform_indices = @transform_0, window_bounds = array<i64: 128, 512>}, {transform_indices = @transform_1, window_bounds = array<i64: 512, 128>}, {transform_indices = @transform_2, window_bounds = array<i64: 1, 128>}, {transform_indices = @transform_3, window_bounds = array<i64: 128, 128>}]} {
    %c0_i32 = arith.constant 0 : i32
    %0 = arith.cmpi eq, %arg2, %c0_i32 : i32
    %1 = arith.extui %0 : i1 to i32
    %c0_i32_0 = arith.constant 0 : i32
    %2 = arith.cmpi ne, %1, %c0_i32_0 : i32
    scf.if %2 {
      %cst_9 = arith.constant 0.000000e+00 : f32
      %12 = vector.broadcast %cst_9 : f32 to vector<128x128xf32>
      %c0_10 = arith.constant 0 : index
      %c0_11 = arith.constant 0 : index
      %13 = vector.load %arg7[%c0_10, %c0_11] : memref<128x128xf32, #tpu.memory_space<vmem>>, vector<128x128xf32>
      tpu.vector_store %arg7[%c0_10, %c0_11], %12 {strides = array<i32>} : memref<128x128xf32, #tpu.memory_space<vmem>>, vector<128x128xf32>,
    } else {
    }
    %c0 = arith.constant 0 : index
    %c0_1 = arith.constant 0 : index
    %3 = vector.load %arg7[%c0, %c0_1] : memref<128x128xf32, #tpu.memory_space<vmem>>, vector<128x128xf32>
    %c0_2 = arith.constant 0 : index
    %c0_3 = arith.constant 0 : index
    %4 = vector.load %arg3[%c0_2, %c0_3] : memref<128x512xbf16, #tpu.memory_space<vmem>>, vector<128x512xbf16>
    %c0_4 = arith.constant 0 : index
    %c0_5 = arith.constant 0 : index
    %5 = vector.load %arg4[%c0_4, %c0_5] : memref<512x128xbf16, #tpu.memory_space<vmem>>, vector<512x128xbf16>
    %cst = arith.constant dense<0.000000e+00> : vector<128x128xf32>
    %6 = tpu.matmul %4, %5, %cst {dimension_numbers = #tpu.dot_dimension_numbers<[1], [0], [0], [1], [0, 0, 1, 1], [], []>} : vector<128x512xbf16>, vector<512x128xbf16>, vector<128x128xf32> -> vector<128x128xf32>
    %7 = arith.addf %3, %6 : vector<128x128xf32>
    %c0_6 = arith.constant 0 : index
    %c0_7 = arith.constant 0 : index
    %8 = vector.load %arg7[%c0_6, %c0_7] : memref<128x128xf32, #tpu.memory_space<vmem>>, vector<128x128xf32>
    tpu.vector_store %arg7[%c0_6, %c0_7], %7 {strides = array<i32>} : memref<128x128xf32, #tpu.memory_space<vmem>>, vector<128x128xf32>,
    %c1_i32 = arith.constant 1 : i32
    %9 = arith.cmpi eq, %arg2, %c1_i32 : i32
    %10 = arith.extui %9 : i1 to i32
    %c0_i32_8 = arith.constant 0 : i32
    %11 = arith.cmpi ne, %10, %c0_i32_8 : i32
    scf.if %11 {
      %c0_9 = arith.constant 0 : index
      %c0_10 = arith.constant 0 : index
      %12 = vector.load %arg7[%c0_9, %c0_10] : memref<128x128xf32, #tpu.memory_space<vmem>>, vector<128x128xf32>
      %c0_11 = arith.constant 0 : index
      %c0_12 = arith.constant 0 : index
      %13 = vector.load %arg5[%c0_11, %c0_12] : memref<1x128xf32, #tpu.memory_space<vmem>>, vector<1x128xf32>
      %14 = vector.broadcast %13 : vector<1x128xf32> to vector<128x128xf32>
      %15 = arith.addf %12, %14 : vector<128x128xf32>
      %cst_13 = arith.constant 0.000000e+00 : f32
      %16 = vector.broadcast %cst_13 : f32 to vector<128x128xf32>
      %17 = arith.maximumf %15, %16 : vector<128x128xf32>
      %18 = arith.truncf %17 : vector<128x128xf32> to vector<128x128xbf16>
      %c0_14 = arith.constant 0 : index
      %c0_15 = arith.constant 0 : index
      %19 = vector.load %arg6[%c0_14, %c0_15] : memref<128x128xbf16, #tpu.memory_space<vmem>>, vector<128x128xbf16>
      tpu.vector_store %arg6[%c0_14, %c0_15], %18 {strides = array<i32>} : memref<128x128xbf16, #tpu.memory_space<vmem>>, vector<128x128xbf16>,
    } else {
    }
    return
  }
  func.func @transform_0(%arg0: i32, %arg1: i32, %arg2: i32) -> (i32, i32) {
    %c0_i32 = arith.constant 0 : i32
    return %arg0, %arg2 : i32, i32
  }
  func.func @transform_1(%arg0: i32, %arg1: i32, %arg2: i32) -> (i32, i32) {
    %c0_i32 = arith.constant 0 : i32
    return %arg2, %arg1 : i32, i32
  }
  func.func @transform_2(%arg0: i32, %arg1: i32, %arg2: i32) -> (i32, i32) {
    %c0_i32 = arith.constant 0 : i32
    %c0_i32_0 = arith.constant 0 : i32
    return %c0_i32, %arg1 : i32, i32
  }
  func.func @transform_3(%arg0: i32, %arg1: i32, %arg2: i32) -> (i32, i32) {
    %c0_i32 = arith.constant 0 : i32
    return %arg0, %arg1 : i32, i32
  }
}

</mosaic_0001>

<bundles_post_ra>
// kernel: tpu_custom_call.1
= control target key start
LH: loop header
LB: loop body
LE: loop exit
PB: predicated region body
PF: predicated region fallthrough
CT: control target
= control target key end

     0   :  { %8 = vsyncpa [#allocation4], 0  ;;  %s2138_s0 = inlined_call_operand.hbm [shape: bf16[128,1024], index: 0, kind: input, shape index: {}]   ;;  %s2139_s1 = inlined_call_operand.hbm [shape: bf16[1024,128], index: 1, kind: input, shape index: {}]   ;;  %s2140_s2 = inlined_call_operand.vmem [shape: f32[1,128], index: 2, kind: input, shape index: {}]   ;;  %s2141_s3 = inlined_call_operand.hbm [shape: bf16[128,128], index: 3, kind: output, shape index: {}]  }
   0x1   :  { %10 = vsyncpa [#allocation4 + $0x1], 0 }
   0x2   :  { %11 = vsyncpa [#allocation7], 0 }
   0x3   :  { %13 = vsyncpa [#allocation7 + $0x1], 0 }
   0x4   :  { %14 = vsyncpa [#allocation5], 0  ;;  %s1863_s12 = smov 0   ;;  %s1865_s13 = smov 0  }
   0x5   :  { %s1867_s14 = smov 0   ;;  %s1869_s15 = smov 0  }
   0x6   :  { %s1871_s16 = smov 0   ;;  %s1873_s17 = smov 0  }
   0x7 LB: > { %s1238_s18 = sadd.s32 4294967295, %s1830_s17   ;;  %s32_s19 = sadd.s32 1, %s1826_s16  ;;  %s1830_s17 = sphi %s1873_s17, %s20_s17   ;;  %s1826_s16 = sphi %s1871_s16, %s2154_s16   ;;  %s1822_s15 = sphi %s1869_s15, %s2153_s15   ;;  %s1818_s14 = sphi %s1867_s14, %s2152_s14   ;;  %s1814_s13 = sphi %s1865_s13, %s2151_s13   ;;  %s1810_s12 = sphi %s1863_s12, %s2150_s12  }
   0x8   : > { %p33_p0 = scmp.ge.s32.totalorder %s32_s19, 2  ;;  %s48_s20 = sadd.s32 1, %s1818_s14 }
   0x9   : > { %p55_p1 = scmp.ne.s32.totalorder %s1818_s14, %s1814_s13  ;;  %p56_p2 = scmp.eq.s32.totalorder %s1830_s17, 0 }
   0xa   : > { %s2156_s19 = smov (%p33_p0, %s32_s19), 0  ;;  %p61_p4 = scmp.ne.s32.totalorder %s1814_s13, %s1810_s12 }
   0xb   : > { %p1899_p3 = por %p56_p2, %p55_p1  ;;  %s44_s22 = ssub.s32 %s1826_s16, %s2156_s19 }
   0xc   : > { %p62_p5 = scmp.eq.s32.totalorder %s1238_s18, 0  ;;  %p46_p6 = scmp.eq.s32.totalorder %s44_s22, 0 }
   0xd   : > { %p1546_p8 = scmp.lt.s32.totalorder %s1830_s17, 2  ;;  %s1917_s25 = sand.u32 1, %s1818_s14  }
   0xe   : > { %p1908_p7 = por %p62_p5, %p61_p4  ;;  %s1338_s26 = sshll.u32 %s1826_s16, 8 }
   0xf   : > { %s1914_s24 = scalar_select %p46_p6, %s1818_s14, %s48_s20  }
  0x10   : > { %s2144_s23 = scalar_select %p1908_p7, 1, 0 }
  0x11   : > { %s1242_s27 = sshll.u32 %s1917_s25, 8  ;;  %s1924_s30 = scalar_lea.hbm %s2138_s0, %s1338_s26 }
  0x12   : > { %s177_s4 = scalar_lea.vmem [#allocation3], %s1242_s27  ;;  %p1930_p9 = pnand %p1546_p8, %p1899_p3 }
  0x13   : > { %s187_s5 = sshll.u32 %s177_s4, 4  ;;  %s174_s7 = scalar_lea.sflag [#allocation4], %s1917_s25  ;;  %s1934_s5 = int_to_ptr.vmem [resolvable:$true] %s187_s5 }
  0x14   : > { %s1686_s8 = scalar_lea.hbm %s1924_s30, 4096  ;;  %p1688_p12 = pneg %p1930_p9 }
  0x15   : > { %p1687_p11 = scmp.ne.s32.totalorder %s1924_s30, %s1686_s8  ;;  %s1691_s11 = scalar_lea.hbm %s2138_s0, 8192 }
  0x16   : > { %p1692_p1 = scmp.lt.u32.totalorder %s1924_s30, %s2138_s0  ;;  %p1693_p2 = scmp.lt.u32.totalorder %s1691_s11, %s1686_s8 }
  0x17   : > { %p1689_p13 = pnand %p1688_p12, %p1687_p11  ;;  %p1695_p4 = scmp.lt.u32.totalorder %s1686_s8, %s1924_s30 }
  0x18   : > { %p1694_p3 = por %p1693_p2, %p1692_p1 }
  0x19   : > { %p1690_p0 = pneg %p1689_p13 }
  0x1a   : > { %p1696_p5 = por %p1695_p4, %p1694_p3 }
  0x1c   : > { %p1697_p6 = pnand %p1696_p5, %p1690_p0 }
  0x1e   : > { %1700 = shalt.err (!%p1697_p6)
}
  0x1f   : > { %s1701_s21 = scalar_lea.vmem %s1934_s5, 4096  ;;  %s1832_s22 = smov [#allocation3]  }
  0x20   : > { %p1702_p8 = scmp.ne.s32.totalorder %s1934_s5, %s1701_s21  ;;  %s1706_s26 = sshll.u32 %s1832_s22, 4  ;;  %s1707_s26 = int_to_ptr.vmem [resolvable:$false] %s1706_s26 }
  0x21   : > { %s1708_s28 = scalar_lea.vmem %s1707_s26, 8192  ;;  %p1709_p10 = scmp.lt.s32.totalorder %s1934_s5, %s1707_s26 }
  0x22   : > { %p1704_p11 = pnand %p1702_p8, %p1688_p12  ;;  %p1710_p1 = scmp.lt.s32.totalorder %s1708_s28, %s1701_s21 }
  0x24   : > { %p1705_p13 = pneg %p1704_p11  ;;  %p1711_p2 = por %p1710_p1, %p1709_p10 }
  0x26   : > { %p1712_p3 = pnand %p1711_p2, %p1705_p13 }
  0x28   : > { %1715 = shalt.err (!%p1712_p3)
}
  0x29   : > { %s1833_s29 = smov 512   ;;  %s1834_s4 = smov 256  }
  0x2a   : > { %s1835_s8 = smov 16   ;;  %p217_p0 = scmp.lt.s32.totalorder %s1830_s17, 3 }
  0x2b   : > { %1542 = dma.hbm_to_vmem [thread:$0]  (!%p1930_p9), %s1924_s30, 4096, %s1934_s5, %s174_s7, %s1833_s29, %s1834_s4, %s1835_s8  }
  0x2c   : > { %s1339_s9 = sshll.u32 %s1826_s16, 12  ;;  %p2146_p10 = scmp.ge.s32.totalorder %s1830_s17, 1 }
  0x2d   : > { %s1976_s20 = scalar_lea.hbm %s2139_s1, %s1339_s9  ;;  %s201_s21 = scalar_lea.vmem [#allocation6], %s1242_s27 }
  0x2e   : > { %p1969_p4 = pnand %p2146_p10, %p217_p0  ;;  %s209_s22 = sshll.u32 %s201_s21, 4  ;;  %s1980_s22 = int_to_ptr.vmem [resolvable:$true] %s209_s22 }
  0x2f   : > { %s198_s30 = scalar_lea.sflag [#allocation7], %s1917_s25  ;;  %s1716_s5 = scalar_lea.hbm %s1976_s20, 4096 }
  0x30   : > { %p1717_p5 = scmp.ne.s32.totalorder %s1976_s20, %s1716_s5  ;;  %s1721_s28 = scalar_lea.hbm %s2139_s1, 8192 }
  0x31   : > { %p1722_p11 = scmp.lt.u32.totalorder %s1976_s20, %s2139_s1  ;;  %p1723_p13 = scmp.lt.u32.totalorder %s1721_s28, %s1716_s5 }
  0x32   : > { %p1719_p6 = pnand %p1717_p5, %p1688_p12  ;;  %p1725_p2 = scmp.lt.u32.totalorder %s1716_s5, %s1976_s20 }
  0x33   : > { %p1724_p1 = por %p1723_p13, %p1722_p11 }
  0x34   : > { %p1720_p8 = pneg %p1719_p6 }
  0x35   : > { %p1726_p3 = por %p1725_p2, %p1724_p1 }
  0x37   : > { %p1727_p0 = pnand %p1726_p3, %p1720_p8 }
  0x39   : > { %1730 = shalt.err (!%p1727_p0)
}
  0x3a   : > { %s1731_s27 = scalar_lea.vmem %s1980_s22, 4096  ;;  %s1836_s8 = smov [#allocation6]  }
  0x3b   : > { %p1732_p10 = scmp.ne.s32.totalorder %s1980_s22, %s1731_s27  ;;  %s1736_s9 = sshll.u32 %s1836_s8, 4  ;;  %s1737_s9 = int_to_ptr.vmem [resolvable:$false] %s1736_s9 }
  0x3c   : > { %s1738_s11 = scalar_lea.vmem %s1737_s9, 8192  ;;  %p1739_p7 = scmp.lt.s32.totalorder %s1980_s22, %s1737_s9 }
  0x3d   : > { %p1734_p5 = pnand %p1732_p10, %p1688_p12  ;;  %p1740_p11 = scmp.lt.s32.totalorder %s1738_s11, %s1731_s27 }
  0x3f   : > { %p1735_p6 = pneg %p1734_p5  ;;  %p1741_p13 = por %p1740_p11, %p1739_p7 }
  0x41   : > { %p1742_p1 = pnand %p1741_p13, %p1735_p6 }
  0x43   : > { %1745 = shalt.err (!%p1742_p1)
}
  0x44   : > { %s1837_s12 = smov 64   ;;  %s1838_s21 = smov 4  }
  0x45   : > { %1545 = dma.hbm_to_vmem [thread:$0]  (!%p1930_p9), %s1976_s20, 4096, %s1980_s22, %s198_s30, %s1837_s12, %s1837_s12, %s1838_s21  }
  0x46   : > { %221 = sbr.rel (%p1969_p4) target bundleno = 443 (0x1bb), region = 32  ;;  %s223_s5 = sand.u32 (!%p1969_p4), 1, %s1814_s13  }
  0x47   : > { %s1249_s7 = sshll.u32 (!%p1969_p4), %s223_s5, 8  ;;  %s224_s26 = scalar_lea.sflag (!%p1969_p4), [#allocation4], %s223_s5 }
  0x48   : > { %s2011_s28 = scalar_lea.vmem (!%p1969_p4), [#allocation3], %s1249_s7  ;;  %p2148_p7 = scmp.ne.s32.totalorder (!%p1969_p4), %s2144_s23, 0 }
  0x4d   : > { %1797 = dma.done.wait (%p2148_p7), %s224_s26, 4096  }
  0x4e   : > { %1799 = vsyncadd (%p2148_p7), %s224_s26, 4294963200  ;;  %s233_s29 = scalar_lea.sflag [#allocation7], %s223_s5  ;;  %s2017_s6 = scalar_lea.vmem [#allocation6], %s1249_s7 }
  0x4f   : > { %1801 = dma.done.wait (%p2148_p7), %s233_s29, 4096  }
  0x50   : > { %1803 = vsyncadd (%p2148_p7), %s233_s29, 4294963200  ;;  %p1251_p9 = scmp.ne.s32.totalorder %s1822_s15, 0 }
  0x51   : > { %v1839_v0 = vmov (!%p1251_p9), 0.0  }
  0x52   : > { %273 = sbr.rel (%p1251_p9) target bundleno = 90 (0x5a), region = 44  ;;  %274 = vst [vmem:[#allocation2] sm:$0xff] (!%p1251_p9), %v1839_v0  ;;  %275 = vst [vmem:[#allocation2 + $0x8] sm:$0xff] (!%p1251_p9), %v1839_v0 }
  0x53   : > { %276 = vst [vmem:[#allocation2 + $0x10] sm:$0xff] (!%p1251_p9), %v1839_v0  ;;  %277 = vst [vmem:[#allocation2 + $0x18] sm:$0xff] (!%p1251_p9), %v1839_v0 }
  0x54   : > { %278 = vst [vmem:[#allocation2 + $0x20] sm:$0xff] (!%p1251_p9), %v1839_v0  ;;  %279 = vst [vmem:[#allocation2 + $0x28] sm:$0xff] (!%p1251_p9), %v1839_v0 }
  0x55   : > { %280 = vst [vmem:[#allocation2 + $0x30] sm:$0xff] (!%p1251_p9), %v1839_v0  ;;  %281 = vst [vmem:[#allocation2 + $0x38] sm:$0xff] (!%p1251_p9), %v1839_v0 }
  0x56   : > { %282 = vst [vmem:[#allocation2 + $0x40] sm:$0xff] (!%p1251_p9), %v1839_v0  ;;  %283 = vst [vmem:[#allocation2 + $0x48] sm:$0xff] (!%p1251_p9), %v1839_v0 }
  0x57   : > { %284 = vst [vmem:[#allocation2 + $0x50] sm:$0xff] (!%p1251_p9), %v1839_v0  ;;  %285 = vst [vmem:[#allocation2 + $0x58] sm:$0xff] (!%p1251_p9), %v1839_v0 }
  0x58   : > { %286 = vst [vmem:[#allocation2 + $0x60] sm:$0xff] (!%p1251_p9), %v1839_v0  ;;  %287 = vst [vmem:[#allocation2 + $0x68] sm:$0xff] (!%p1251_p9), %v1839_v0 }
  0x59   : > { %288 = vst [vmem:[#allocation2 + $0x70] sm:$0xff] %v1839_v0  ;;  %289 = vst [vmem:[#allocation2 + $0x78] sm:$0xff] %v1839_v0 }
  0x5a PF: > { %v1606_v1 = vld [vmem:[%s2017_s6 + $0x40] sm:$0xff]   ;;  %v1610_v5 = vld [vmem:[%s2017_s6 + $0x48] sm:$0xff]   ;;  %v1614_v9 = vld [vmem:[%s2017_s6 + $0x50] sm:$0xff]   ;;  %p1316_p12 = scmp.ne.s32.totalorder %s1822_s15, 1 }
  0x5b   : > { %v1607_v2 = vld [vmem:[%s2017_s6 + $0xc0] sm:$0xff]   ;;  %1403 = vmatprep.subr.bf16.mxu0 %v1606_v1  ;;  %v1611_v6 = vld [vmem:[%s2017_s6 + $0xc8] sm:$0xff]   ;;  %v1615_v10 = vld [vmem:[%s2017_s6 + $0xd0] sm:$0xff]  }
  0x5c   : > { %v1608_v3 = vld [vmem:[%s2017_s6] sm:$0xff]   ;;  %1467 = vmatprep.subr.bf16.mxu1 %v1607_v2  ;;  %v1612_v7 = vld [vmem:[%s2017_s6 + $0x8] sm:$0xff]   ;;  %v1616_v11 = vld [vmem:[%s2017_s6 + $0x10] sm:$0xff]  }
  0x5d   : > { %v1609_v4 = vld [vmem:[%s2017_s6 + $0x80] sm:$0xff]   ;;  %1404 = vmatpush3.bf16.msra.mxu0 %v1608_v3  ;;  %v1613_v8 = vld [vmem:[%s2017_s6 + $0x88] sm:$0xff]   ;;  %v1617_v12 = vld [vmem:[%s2017_s6 + $0x90] sm:$0xff]  }
  0x5e   : > { %1468 = vmatpush3.bf16.msra.mxu1 %v1609_v4  ;;  %1405 = vmatprep.subr.bf16.mxu0 %v1610_v5  ;;  %v1618_v13 = vld [vmem:[%s2017_s6 + $0x58] sm:$0xff]   ;;  %v1622_v17 = vld [vmem:[%s2017_s6 + $0x60] sm:$0xff]   ;;  %v1626_v21 = vld [vmem:[%s2017_s6 + $0x68] sm:$0xff]  }
  0x5f   : > { %1469 = vmatprep.subr.bf16.mxu1 %v1611_v6  ;;  %v1619_v14 = vld [vmem:[%s2017_s6 + $0xd8] sm:$0xff]   ;;  %v1623_v18 = vld [vmem:[%s2017_s6 + $0xe0] sm:$0xff]   ;;  %v1627_v22 = vld [vmem:[%s2017_s6 + $0xe8] sm:$0xff]  }
  0x60   : > { %v1620_v15 = vld [vmem:[%s2017_s6 + $0x18] sm:$0xff]   ;;  %v1624_v19 = vld [vmem:[%s2017_s6 + $0x20] sm:$0xff]   ;;  %v1628_v23 = vld [vmem:[%s2017_s6 + $0x28] sm:$0xff]  }
  0x61   : > { %1406 = vmatpush3.bf16.msra.mxu0 %v1612_v7  ;;  %v1621_v16 = vld [vmem:[%s2017_s6 + $0x98] sm:$0xff]   ;;  %v1625_v20 = vld [vmem:[%s2017_s6 + $0xa0] sm:$0xff]   ;;  %v1629_v24 = vld [vmem:[%s2017_s6 + $0xa8] sm:$0xff]  }
  0x62   : > { %1470 = vmatpush3.bf16.msra.mxu1 %v1613_v8  ;;  %1407 = vmatprep.subr.bf16.mxu0 %v1614_v9  ;;  %v1630_v25 = vld [vmem:[%s2017_s6 + $0x70] sm:$0xff]   ;;  %v1634_v29 = vld [vmem:[%s2017_s6 + $0x78] sm:$0xff]  }
  0x63   : > { %1471 = vmatprep.subr.bf16.mxu1 %v1615_v10  ;;  %v1631_v26 = vld [vmem:[%s2017_s6 + $0xf0] sm:$0xff]   ;;  %v1635_v30 = vld [vmem:[%s2017_s6 + $0xf8] sm:$0xff]   ;;  %v290_v10 = vld [vmem:[#allocation2] sm:$0xff] }
  0x64   : > { %v1632_v27 = vld [vmem:[%s2017_s6 + $0x30] sm:$0xff]   ;;  %v1636_v31 = vld [vmem:[%s2017_s6 + $0x38] sm:$0xff]  }
  0x65   : > { %1408 = vmatpush3.bf16.msra.mxu0 %v1616_v11  ;;  %v1633_v28 = vld [vmem:[%s2017_s6 + $0xb0] sm:$0xff]   ;;  %v1637_v32 = vld [vmem:[%s2017_s6 + $0xb8] sm:$0xff]  }
  0x66   : > { %1472 = vmatpush3.bf16.msra.mxu1 %v1617_v12  ;;  %1409 = vmatprep.subr.bf16.mxu0 %v1618_v13  ;;  %v1638_v33 = vld [vmem:[%s2011_s28] ss:$16 sps:$4 sm:$0xff]   ;;  %v1640_v34 = vld [vmem:[%s2011_s28 + $0x4] ss:$16 sps:$4 sm:$0xff]   ;;  %v1641_v35 = vld [vmem:[%s2011_s28 + $0x8] ss:$16 sps:$4 sm:$0xff]  }
  0x67   : > { %1473 = vmatprep.subr.bf16.mxu1 %v1619_v14  ;;  %v1643_v36 = vld [vmem:[%s2011_s28 + $0xc] ss:$16 sps:$4 sm:$0xff]   ;;  %786 = vmatprep.mubr.bf16.mxu0 %v1640_v34  ;;  %v1644_v37 = vld [vmem:[%s2011_s28 + $0x24] ss:$16 sps:$4 sm:$0xff]   ;;  %v1648_v39 = vld [vmem:[%s2011_s28 + $0x20] ss:$16 sps:$4 sm:$0xff]  }
  0x68   : > { %883 = vmatprep.mubr.bf16.mxu1 %v1643_v36  ;;  %v1646_v38 = vld [vmem:[%s2011_s28 + $0x2c] ss:$16 sps:$4 sm:$0xff]   ;;  %v1649_v40 = vld [vmem:[%s2011_s28 + $0x28] ss:$16 sps:$4 sm:$0xff]   ;;  %v1650_v41 = vld [vmem:[%s2011_s28 + $0x44] ss:$16 sps:$4 sm:$0xff]  }
  0x69   : > { %1410 = vmatpush3.bf16.msra.mxu0 %v1620_v15  ;;  %v1652_v42 = vld [vmem:[%s2011_s28 + $0x4c] ss:$16 sps:$4 sm:$0xff]   ;;  %v1654_v43 = vld [vmem:[%s2011_s28 + $0x40] ss:$16 sps:$4 sm:$0xff]   ;;  %v1655_v44 = vld [vmem:[%s2011_s28 + $0x48] ss:$16 sps:$4 sm:$0xff]  }
  0x6a   : > { %1474 = vmatpush3.bf16.msra.mxu1 %v1621_v16  ;;  %1411 = vmatprep.subr.bf16.mxu0 %v1622_v17  ;;  %v1656_v45 = vld [vmem:[%s2011_s28 + $0x64] ss:$16 sps:$4 sm:$0xff]   ;;  %v1658_v46 = vld [vmem:[%s2011_s28 + $0x6c] ss:$16 sps:$4 sm:$0xff]   ;;  %v1660_v47 = vld [vmem:[%s2011_s28 + $0x60] ss:$16 sps:$4 sm:$0xff]  }
  0x6b   : > { %1475 = vmatprep.subr.bf16.mxu1 %v1623_v18  ;;  %v1661_v48 = vld [vmem:[%s2011_s28 + $0x68] ss:$16 sps:$4 sm:$0xff]   ;;  %v1662_v49 = vld [vmem:[%s2011_s28 + $0x84] ss:$16 sps:$4 sm:$0xff]   ;;  %v1664_v50 = vld [vmem:[%s2011_s28 + $0x8c] ss:$16 sps:$4 sm:$0xff]  }
  0x6c   : > { %v1666_v51 = vld [vmem:[%s2011_s28 + $0x80] ss:$16 sps:$4 sm:$0xff]   ;;  %v1667_v52 = vld [vmem:[%s2011_s28 + $0x88] ss:$16 sps:$4 sm:$0xff]   ;;  %v1668_v53 = vld [vmem:[%s2011_s28 + $0xa4] ss:$16 sps:$4 sm:$0xff]  }
  0x6d   : > { %1412 = vmatpush3.bf16.msra.mxu0 %v1624_v19  ;;  %v1670_v54 = vld [vmem:[%s2011_s28 + $0xac] ss:$16 sps:$4 sm:$0xff]   ;;  %v1672_v55 = vld [vmem:[%s2011_s28 + $0xa0] ss:$16 sps:$4 sm:$0xff]   ;;  %v1673_v56 = vld [vmem:[%s2011_s28 + $0xa8] ss:$16 sps:$4 sm:$0xff]  }
  0x6e   : > { %1476 = vmatpush3.bf16.msra.mxu1 %v1625_v20  ;;  %1413 = vmatprep.subr.bf16.mxu0 %v1626_v21  ;;  %v1674_v57 = vld [vmem:[%s2011_s28 + $0xc4] ss:$16 sps:$4 sm:$0xff]   ;;  %v1676_v58 = vld [vmem:[%s2011_s28 + $0xcc] ss:$16 sps:$4 sm:$0xff]   ;;  %v1678_v59 = vld [vmem:[%s2011_s28 + $0xc0] ss:$16 sps:$4 sm:$0xff]  }
  0x6f   : > { %1477 = vmatprep.subr.bf16.mxu1 %v1627_v22  ;;  %v1679_v60 = vld [vmem:[%s2011_s28 + $0xc8] ss:$16 sps:$4 sm:$0xff]   ;;  %v1680_v61 = vld [vmem:[%s2011_s28 + $0xe4] ss:$16 sps:$4 sm:$0xff]   ;;  %v1682_v62 = vld [vmem:[%s2011_s28 + $0xec] ss:$16 sps:$4 sm:$0xff]  }
  0x70   : > { %v1684_v63 = vld [vmem:[%s2011_s28 + $0xe0] ss:$16 sps:$4 sm:$0xff]   ;;  %v1685_v0 = vld [vmem:[%s2011_s28 + $0xe8] ss:$16 sps:$4 sm:$0xff]  }
  0x71   : > { %1414 = vmatpush3.bf16.msra.mxu0 %v1628_v23  ;;  %v291_v15 = vld [vmem:[#allocation2 + $0x8] sm:$0xff] }
  0x72   : > { %1478 = vmatpush3.bf16.msra.mxu1 %v1629_v24  ;;  %1415 = vmatprep.subr.bf16.mxu0 %v1630_v25 }
  0x73   : > { %1479 = vmatprep.subr.bf16.mxu1 %v1631_v26 }
  0x75   : > { %1416 = vmatpush3.bf16.msra.mxu0 %v1632_v27 }
  0x76   : > { %1480 = vmatpush3.bf16.msra.mxu1 %v1633_v28  ;;  %1417 = vmatprep.subr.bf16.mxu0 %v1634_v29  ;;  %v292_v28 = vld [vmem:[#allocation2 + $0x10] sm:$0xff] }
  0x77   : > { %1481 = vmatprep.subr.bf16.mxu1 %v1635_v30 }
  0x79   : > { %1418 = vmatpush3.bf16.msra.mxu0 %v1636_v31 }
  0x7a   : > { %1482 = vmatpush3.bf16.msra.mxu1 %v1637_v32 }
  0x7c   : > { %787 = vmatmul.mubr.bf16.vlgmr.msra.gmra.mrb[0].mxu0 %v1638_v33  ;;  %v293_v33 = vld [vmem:[#allocation2 + $0x18] sm:$0xff] }
  0x7d   : > { %884 = vmatmul.mubr.bf16.vlgmr.msra.gmra.mrb[0].mxu1 %v1641_v35  ;;  %794 = vmatprep.mubr.bf16.mxu0 %v1644_v37 }
  0x7e   : > { %891 = vmatprep.mubr.bf16.mxu1 %v1646_v38 }
  0x84   : > { %795 = vmatmul.mubr.bf16.gmra.mrb[4].mxu0 %v1648_v39 }
  0x85   : > { %892 = vmatmul.mubr.bf16.gmra.mrb[4].mxu1 %v1649_v40  ;;  %802 = vmatprep.mubr.bf16.mxu0 %v1650_v41 }
  0x86   : > { %899 = vmatprep.mubr.bf16.mxu1 %v1652_v42 }
  0x8c   : > { %803 = vmatmul.mubr.bf16.gmra.mrb[8].mxu0 %v1654_v43 }
  0x8d   : > { %900 = vmatmul.mubr.bf16.gmra.mrb[8].mxu1 %v1655_v44  ;;  %810 = vmatprep.mubr.bf16.mxu0 %v1656_v45 }
  0x8e   : > { %907 = vmatprep.mubr.bf16.mxu1 %v1658_v46  ;;  %v294_v46 = vld [vmem:[#allocation2 + $0x20] sm:$0xff] }
  0x94   : > { %811 = vmatmul.mubr.bf16.gmra.mrb[12].mxu0 %v1660_v47 }
  0x95   : > { %908 = vmatmul.mubr.bf16.gmra.mrb[12].mxu1 %v1661_v48  ;;  %818 = vmatprep.mubr.bf16.mxu0 %v1662_v49 }
  0x96   : > { %915 = vmatprep.mubr.bf16.mxu1 %v1664_v50 }
  0x9c   : > { %819 = vmatmul.mubr.bf16.gmra.mrb[16].mxu0 %v1666_v51  ;;  %v295_v51 = vld [vmem:[#allocation2 + $0x28] sm:$0xff] }
  0x9d   : > { %916 = vmatmul.mubr.bf16.gmra.mrb[16].mxu1 %v1667_v52  ;;  %826 = vmatprep.mubr.bf16.mxu0 %v1668_v53 }
  0x9e   : > { %923 = vmatprep.mubr.bf16.mxu1 %v1670_v54 }
  0xa4   : > { %827 = vmatmul.mubr.bf16.gmra.mrb[20].mxu0 %v1672_v55 }
  0xa5   : > { %924 = vmatmul.mubr.bf16.gmra.mrb[20].mxu1 %v1673_v56  ;;  %834 = vmatprep.mubr.bf16.mxu0 %v1674_v57 }
  0xa6   : > { %931 = vmatprep.mubr.bf16.mxu1 %v1676_v58 }
  0xac   : > { %835 = vmatmul.mubr.bf16.gmra.mrb[24].mxu0 %v1678_v59 }
  0xad   : > { %932 = vmatmul.mubr.bf16.gmra.mrb[24].mxu1 %v1679_v60  ;;  %842 = vmatprep.mubr.bf16.mxu0 %v1680_v61 }
  0xae   : > { %939 = vmatprep.mubr.bf16.mxu1 %v1682_v62 }
  0xb4   : > { %843 = vmatmul.mubr.bf16.gmra.mrb[28].mxu0 %v1684_v63 }
  0xb5   : > { %940 = vmatmul.mubr.bf16.gmra.mrb[28].mxu1 %v1685_v0  ;;  %v296_v0 = vld [vmem:[#allocation2 + $0x30] sm:$0xff] }
 0x14f   : > { %v1419_v1 = vpop.f32.mrb[0].mxu0 }
 0x150   : > { %v1483_v2 = vpop.f32.mrb[0].mxu1  ;;  %v1420_v3 = vpop.f32.mrb[1].mxu0 }
 0x151   : > { %v1421_v4 = vadd.f32 %v1420_v3, %v1419_v1  ;;  %v1484_v5 = vpop.f32.mrb[1].mxu1  ;;  %v1422_v6 = vpop.f32.mrb[2].mxu0 }
 0x152   : > { %v1485_v7 = vadd.f32 %v1484_v5, %v1483_v2  ;;  %v1486_v8 = vpop.f32.mrb[2].mxu1  ;;  %v1423_v9 = vpop.f32.mrb[3].mxu0  ;;  %v297_v5 = vld [vmem:[#allocation2 + $0x38] sm:$0xff] }
 0x153   : > { %v1424_v11 = vadd.f32 %v1423_v9, %v1422_v6  ;;  %v1487_v12 = vpop.f32.mrb[3].mxu1 }
 0x154   : > { %v886_v13 = vadd.f32 %v1485_v7, %v1421_v4  ;;  %v1488_v14 = vadd.f32 %v1487_v12, %v1486_v8 }
 0x156   : > { %v948_v16 = vadd.f32 %v886_v13, %v290_v10  ;;  %v889_v17 = vadd.f32 %v1488_v14, %v1424_v11 }
 0x157   : > { %v1425_v18 = vpop.f32.mrb[4].mxu0 }
 0x158   : > { %964 = vst [vmem:[#allocation2] sm:$0xff] %v948_v16  ;;  %v949_v19 = vadd.f32 %v889_v17, %v291_v15  ;;  %v1489_v20 = vpop.f32.mrb[4].mxu1  ;;  %v1426_v21 = vpop.f32.mrb[5].mxu0 }
 0x159   : > { %v1427_v22 = vadd.f32 %v1426_v21, %v1425_v18  ;;  %v1490_v23 = vpop.f32.mrb[5].mxu1  ;;  %v1428_v24 = vpop.f32.mrb[6].mxu0  ;;  %v298_v18 = vld [vmem:[#allocation2 + $0x40] sm:$0xff] }
 0x15a   : > { %965 = vst [vmem:[#allocation2 + $0x8] sm:$0xff] %v949_v19  ;;  %v1491_v25 = vadd.f32 %v1490_v23, %v1489_v20  ;;  %v1492_v26 = vpop.f32.mrb[6].mxu1  ;;  %v1429_v27 = vpop.f32.mrb[7].mxu0  ;;  %v299_v23 = vld [vmem:[#allocation2 + $0x48] sm:$0xff] }
 0x15b   : > { %v1430_v29 = vadd.f32 %v1429_v27, %v1428_v24  ;;  %v1493_v30 = vpop.f32.mrb[7].mxu1 }
 0x15c   : > { %v894_v31 = vadd.f32 %v1491_v25, %v1427_v22  ;;  %v1494_v32 = vadd.f32 %v1493_v30, %v1492_v26 }
 0x15e   : > { %v950_v34 = vadd.f32 %v894_v31, %v292_v28  ;;  %v897_v35 = vadd.f32 %v1494_v32, %v1430_v29 }
 0x15f   : > { %v1431_v36 = vpop.f32.mrb[8].mxu0 }
 0x160   : > { %966 = vst [vmem:[#allocation2 + $0x10] sm:$0xff] %v950_v34  ;;  %v951_v37 = vadd.f32 %v897_v35, %v293_v33  ;;  %v1495_v38 = vpop.f32.mrb[8].mxu1  ;;  %v1432_v39 = vpop.f32.mrb[9].mxu0 }
 0x161   : > { %v1433_v40 = vadd.f32 %v1432_v39, %v1431_v36  ;;  %v1496_v41 = vpop.f32.mrb[9].mxu1  ;;  %v1434_v42 = vpop.f32.mrb[10].mxu0  ;;  %v300_v36 = vld [vmem:[#allocation2 + $0x50] sm:$0xff] }
 0x162   : > { %967 = vst [vmem:[#allocation2 + $0x18] sm:$0xff] %v951_v37  ;;  %v1497_v43 = vadd.f32 %v1496_v41, %v1495_v38  ;;  %v1498_v44 = vpop.f32.mrb[10].mxu1  ;;  %v1435_v45 = vpop.f32.mrb[11].mxu0  ;;  %v301_v41 = vld [vmem:[#allocation2 + $0x58] sm:$0xff] }
 0x163   : > { %v1436_v47 = vadd.f32 %v1435_v45, %v1434_v42  ;;  %v1499_v48 = vpop.f32.mrb[11].mxu1 }
 0x164   : > { %v902_v49 = vadd.f32 %v1497_v43, %v1433_v40  ;;  %v1500_v50 = vadd.f32 %v1499_v48, %v1498_v44 }
 0x166   : > { %v952_v52 = vadd.f32 %v902_v49, %v294_v46  ;;  %v905_v53 = vadd.f32 %v1500_v50, %v1436_v47 }
 0x167   : > { %v1437_v54 = vpop.f32.mrb[12].mxu0 }
 0x168   : > { %968 = vst [vmem:[#allocation2 + $0x20] sm:$0xff] %v952_v52  ;;  %v953_v55 = vadd.f32 %v905_v53, %v295_v51  ;;  %v1501_v56 = vpop.f32.mrb[12].mxu1  ;;  %v1438_v57 = vpop.f32.mrb[13].mxu0 }
 0x169   : > { %v1439_v58 = vadd.f32 %v1438_v57, %v1437_v54  ;;  %v1502_v59 = vpop.f32.mrb[13].mxu1  ;;  %v1440_v60 = vpop.f32.mrb[14].mxu0  ;;  %v302_v54 = vld [vmem:[#allocation2 + $0x60] sm:$0xff] }
 0x16a   : > { %969 = vst [vmem:[#allocation2 + $0x28] sm:$0xff] %v953_v55  ;;  %v1503_v61 = vadd.f32 %v1502_v59, %v1501_v56  ;;  %v1504_v62 = vpop.f32.mrb[14].mxu1  ;;  %v1441_v63 = vpop.f32.mrb[15].mxu0  ;;  %v303_v59 = vld [vmem:[#allocation2 + $0x68] sm:$0xff] }
 0x16b   : > { %v1442_v1 = vadd.f32 %v1441_v63, %v1440_v60  ;;  %v1505_v2 = vpop.f32.mrb[15].mxu1 }
 0x16c   : > { %v910_v3 = vadd.f32 %v1503_v61, %v1439_v58  ;;  %v1506_v4 = vadd.f32 %v1505_v2, %v1504_v62 }
 0x16e   : > { %v954_v6 = vadd.f32 %v910_v3, %v296_v0  ;;  %v913_v7 = vadd.f32 %v1506_v4, %v1442_v1 }
 0x16f   : > { %v1443_v8 = vpop.f32.mrb[16].mxu0 }
 0x170   : > { %970 = vst [vmem:[#allocation2 + $0x30] sm:$0xff] %v954_v6  ;;  %v955_v9 = vadd.f32 %v913_v7, %v297_v5  ;;  %v1507_v10 = vpop.f32.mrb[16].mxu1  ;;  %v1444_v11 = vpop.f32.mrb[17].mxu0 }
 0x171   : > { %v1445_v12 = vadd.f32 %v1444_v11, %v1443_v8  ;;  %v1508_v13 = vpop.f32.mrb[17].mxu1  ;;  %v1446_v14 = vpop.f32.mrb[18].mxu0  ;;  %v304_v8 = vld [vmem:[#allocation2 + $0x70] sm:$0xff] }
 0x172   : > { %971 = vst [vmem:[#allocation2 + $0x38] sm:$0xff] %v955_v9  ;;  %v1509_v15 = vadd.f32 %v1508_v13, %v1507_v10  ;;  %v1510_v16 = vpop.f32.mrb[18].mxu1  ;;  %v1447_v17 = vpop.f32.mrb[19].mxu0  ;;  %v305_v13 = vld [vmem:[#allocation2 + $0x78] sm:$0xff] }
 0x173   : > { %v1448_v19 = vadd.f32 %v1447_v17, %v1446_v14  ;;  %v1511_v20 = vpop.f32.mrb[19].mxu1  ;;  %v984_v17 = vld [vmem:[#allocation2] sm:$0xff] (!%p1316_p12) }
 0x174   : > { %v918_v21 = vadd.f32 %v1509_v15, %v1445_v12  ;;  %v1512_v22 = vadd.f32 %v1511_v20, %v1510_v16 }
 0x176   : > { %v956_v24 = vadd.f32 %v918_v21, %v298_v18  ;;  %v921_v25 = vadd.f32 %v1512_v22, %v1448_v19  ;;  %v985_v18 = vld [vmem:[#allocation2 + $0x8] sm:$0xff] (!%p1316_p12)  ;;  %v1317_v19 = vld [vmem:[%s2140_s2] ss:$0 sm:$0xff] (!%p1316_p12)  ;;  %v986_v22 = vld [vmem:[#allocation2 + $0x10] sm:$0xff] (!%p1316_p12) }
 0x177   : > { %v1449_v26 = vpop.f32.mrb[20].mxu0  ;;  %v1007_v20 = vadd.f32 (!%p1316_p12), %v1317_v19, %v984_v17  ;;  %v1008_v21 = vadd.f32 (!%p1316_p12), %v1317_v19, %v985_v18 }
 0x178   : > { %972 = vst [vmem:[#allocation2 + $0x40] sm:$0xff] %v956_v24  ;;  %v957_v27 = vadd.f32 %v921_v25, %v299_v23  ;;  %v1513_v28 = vpop.f32.mrb[20].mxu1  ;;  %v1450_v29 = vpop.f32.mrb[21].mxu0  ;;  %v987_v23 = vld [vmem:[#allocation2 + $0x18] sm:$0xff] (!%p1316_p12)  ;;  %v988_v24 = vld [vmem:[#allocation2 + $0x20] sm:$0xff] (!%p1316_p12)  ;;  %v1009_v25 = vadd.f32 (!%p1316_p12), %v1317_v19, %v986_v22 }
 0x179   : > { %v1451_v30 = vadd.f32 %v1450_v29, %v1449_v26  ;;  %v1514_v31 = vpop.f32.mrb[21].mxu1  ;;  %v1452_v32 = vpop.f32.mrb[22].mxu0  ;;  %v1010_v26 = vadd.f32 (!%p1316_p12), %v1317_v19, %v987_v23  ;;  %v990_v29 = vld [vmem:[#allocation2 + $0x30] sm:$0xff] (!%p1316_p12) }
 0x17a   : > { %973 = vst [vmem:[#allocation2 + $0x48] sm:$0xff] %v957_v27  ;;  %v1515_v33 = vadd.f32 %v1514_v31, %v1513_v28  ;;  %v1516_v34 = vpop.f32.mrb[22].mxu1  ;;  %v1453_v35 = vpop.f32.mrb[23].mxu0  ;;  %v989_v27 = vld [vmem:[#allocation2 + $0x28] sm:$0xff] (!%p1316_p12)  ;;  %v1011_v28 = vadd.f32 (!%p1316_p12), %v1317_v19, %v988_v24  ;;  %v1023_v31 = vmax.f32 (!%p1316_p12), %v1007_v20, 0.0 }
 0x17b   : > { %v1454_v37 = vadd.f32 %v1453_v35, %v1452_v32  ;;  %v1517_v38 = vpop.f32.mrb[23].mxu1  ;;  %v1024_v32 = vmax.f32 (!%p1316_p12), %v1008_v21, 0.0 }
 0x17c   : > { %v926_v39 = vadd.f32 %v1515_v33, %v1451_v30  ;;  %v1518_v40 = vadd.f32 %v1517_v38, %v1516_v34  ;;  %v991_v30 = vld [vmem:[#allocation2 + $0x38] sm:$0xff] (!%p1316_p12)  ;;  %v1012_v33 = vadd.f32 (!%p1316_p12), %v1317_v19, %v989_v27  ;;  %v1013_v34 = vadd.f32 (!%p1316_p12), %v1317_v19, %v990_v29 }
 0x17d   : > { %v1025_v38 = vmax.f32 (!%p1316_p12), %v1009_v25, 0.0 }
 0x17e   : > { %v958_v42 = vadd.f32 %v926_v39, %v300_v36  ;;  %v929_v43 = vadd.f32 %v1518_v40, %v1454_v37  ;;  %v1026_v39 = vmax.f32 (!%p1316_p12), %v1010_v26, 0.0  ;;  %v1027_v40 = vmax.f32 (!%p1316_p12), %v1011_v28, 0.0 }
 0x17f   : > { %v1455_v44 = vpop.f32.mrb[24].mxu0  ;;  %v992_v35 = vld [vmem:[#allocation2 + $0x40] sm:$0xff] (!%p1316_p12) }
 0x180   : > { %974 = vst [vmem:[#allocation2 + $0x50] sm:$0xff] %v958_v42  ;;  %v959_v45 = vadd.f32 %v929_v43, %v301_v41  ;;  %v1519_v46 = vpop.f32.mrb[24].mxu1  ;;  %v1456_v47 = vpop.f32.mrb[25].mxu0  ;;  %v1014_v41 = vadd.f32 (!%p1316_p12), %v1317_v19, %v991_v30 }
 0x181   : > { %v1457_v48 = vadd.f32 %v1456_v47, %v1455_v44  ;;  %v1520_v49 = vpop.f32.mrb[25].mxu1  ;;  %v1458_v50 = vpop.f32.mrb[26].mxu0  ;;  %v993_v36 = vld [vmem:[#allocation2 + $0x48] sm:$0xff] (!%p1316_p12)  ;;  %v1359_v44 = vpack.c.bf16 (!%p1316_p12), %v1024_v32, %v1023_v31  ;;  %v1015_v47 = vadd.f32 (!%p1316_p12), %v1317_v19, %v992_v35 }
 0x182   : > { %975 = vst [vmem:[#allocation2 + $0x58] sm:$0xff] %v959_v45  ;;  %v1521_v51 = vadd.f32 %v1520_v49, %v1519_v46  ;;  %v1522_v52 = vpop.f32.mrb[26].mxu1  ;;  %v1459_v53 = vpop.f32.mrb[27].mxu0  ;;  %v1028_v45 = vmax.f32 (!%p1316_p12), %v1012_v33, 0.0  ;;  %v1029_v46 = vmax.f32 (!%p1316_p12), %v1013_v34, 0.0  ;;  %v1364_v49 = vpack.c.bf16 (!%p1316_p12), %v1026_v39, %v1025_v38 }
 0x183   : > { %v1460_v55 = vadd.f32 %v1459_v53, %v1458_v50  ;;  %v1523_v56 = vpop.f32.mrb[27].mxu1  ;;  %v1030_v50 = vmax.f32 (!%p1316_p12), %v1014_v41, 0.0  ;;  %1360 = vst [vmem:[#allocation8] sm:$0xff] (!%p1316_p12), %v1359_v44  }
 0x184   : > { %v934_v57 = vadd.f32 %v1521_v51, %v1457_v48  ;;  %v1524_v58 = vadd.f32 %v1523_v56, %v1522_v52  ;;  %v1016_v51 = vadd.f32 (!%p1316_p12), %v1317_v19, %v993_v36  ;;  %v1031_v56 = vmax.f32 (!%p1316_p12), %v1015_v47, 0.0  ;;  %1396 = vst [vmem:[#allocation8 + $0x8] sm:$0xff] (!%p1316_p12), %v1364_v49  }
 0x186   : > { %v960_v60 = vadd.f32 %v934_v57, %v302_v54  ;;  %v937_v61 = vadd.f32 %v1524_v58, %v1460_v55  ;;  %v1369_v55 = vpack.c.bf16 (!%p1316_p12), %v1028_v45, %v1027_v40 }
 0x187   : > { %v1461_v62 = vpop.f32.mrb[28].mxu0  ;;  %v994_v37 = vld [vmem:[#allocation2 + $0x50] sm:$0xff] (!%p1316_p12) }
 0x188   : > { %976 = vst [vmem:[#allocation2 + $0x60] sm:$0xff] %v960_v60  ;;  %v961_v63 = vadd.f32 %v937_v61, %v303_v59  ;;  %v1525_v0 = vpop.f32.mrb[28].mxu1  ;;  %v1462_v1 = vpop.f32.mrb[29].mxu0  ;;  %v1017_v52 = vadd.f32 (!%p1316_p12), %v1317_v19, %v994_v37  ;;  %v1374_v59 = vpack.c.bf16 (!%p1316_p12), %v1030_v50, %v1029_v46  ;;  %v1032_v60 = vmax.f32 (!%p1316_p12), %v1016_v51, 0.0  ;;  %1397 = vst [vmem:[#allocation8 + $0x10] sm:$0xff] (!%p1316_p12), %v1369_v55  }
 0x189   : > { %v1463_v2 = vadd.f32 %v1462_v1, %v1461_v62  ;;  %v1526_v3 = vpop.f32.mrb[29].mxu1  ;;  %v1464_v4 = vpop.f32.mrb[30].mxu0  ;;  %v995_v42 = vld [vmem:[#allocation2 + $0x58] sm:$0xff] (!%p1316_p12) }
 0x18a   : > { %977 = vst [vmem:[#allocation2 + $0x68] sm:$0xff] %v961_v63  ;;  %v1527_v5 = vadd.f32 %v1526_v3, %v1525_v0  ;;  %v1528_v6 = vpop.f32.mrb[30].mxu1  ;;  %v1465_v7 = vpop.f32.mrb[31].mxu0  ;;  %v1018_v57 = vadd.f32 (!%p1316_p12), %v1317_v19, %v995_v42  ;;  %v1033_v61 = vmax.f32 (!%p1316_p12), %v1017_v52, 0.0  ;;  %1398 = vst [vmem:[#allocation8 + $0x18] sm:$0xff] (!%p1316_p12), %v1374_v59   ;;  %v1379_v3 = vpack.c.bf16 (!%p1316_p12), %v1032_v60, %v1031_v56 }
 0x18b   : > { %v1466_v9 = vadd.f32 %v1465_v7, %v1464_v4  ;;  %v1529_v10 = vpop.f32.mrb[31].mxu1 }
 0x18c   : > { %v942_v11 = vadd.f32 %v1527_v5, %v1463_v2  ;;  %v1530_v12 = vadd.f32 %v1529_v10, %v1528_v6  ;;  %983 = sbr.rel (%p1316_p12) target bundleno = 417 (0x1a1), region = 48  ;;  %v1034_v63 = vmax.f32 (!%p1316_p12), %v1018_v57, 0.0  ;;  %1399 = vst [vmem:[#allocation8 + $0x20] sm:$0xff] (!%p1316_p12), %v1379_v3  }
 0x18e   : > { %v962_v14 = vadd.f32 %v942_v11, %v304_v8  ;;  %v945_v15 = vadd.f32 %v1530_v12, %v1466_v9  ;;  %v1384_v5 = vpack.c.bf16 (!%p1316_p12), %v1034_v63, %v1033_v61 }
 0x18f   : > { %v996_v43 = vld [vmem:[#allocation2 + $0x60] sm:$0xff] (!%p1316_p12) }
 0x190   : > { %978 = vst [vmem:[#allocation2 + $0x70] sm:$0xff] %v962_v14  ;;  %v963_v16 = vadd.f32 %v945_v15, %v305_v13  ;;  %v1019_v58 = vadd.f32 (!%p1316_p12), %v1317_v19, %v996_v43  ;;  %1400 = vst [vmem:[#allocation8 + $0x28] sm:$0xff] (!%p1316_p12), %v1384_v5  }
 0x191   : > { %v997_v48 = vld [vmem:[#allocation2 + $0x68] sm:$0xff] (!%p1316_p12) }
 0x192   : > { %979 = vst [vmem:[#allocation2 + $0x78] sm:$0xff] %v963_v16  ;;  %v1020_v62 = vadd.f32 (!%p1316_p12), %v1317_v19, %v997_v48  ;;  %v1035_v0 = vmax.f32 (!%p1316_p12), %v1019_v58, 0.0 }
 0x194   : > { %v1036_v4 = vmax.f32 %v1020_v62, 0.0 }
 0x196   : > { %v1389_v8 = vpack.c.bf16 %v1036_v4, %v1035_v0 }
 0x197   : > { %v998_v53 = vld [vmem:[#allocation2 + $0x70] sm:$0xff] }
 0x198   : > { %v1021_v1 = vadd.f32 %v1317_v19, %v998_v53  ;;  %1401 = vst [vmem:[#allocation8 + $0x30] sm:$0xff] %v1389_v8  }
 0x199   : > { %v999_v54 = vld [vmem:[#allocation2 + $0x78] sm:$0xff] }
 0x19a   : > { %v1022_v2 = vadd.f32 %v1317_v19, %v999_v54  ;;  %v1037_v6 = vmax.f32 %v1021_v1, 0.0 }
 0x19c   : > { %v1038_v7 = vmax.f32 %v1022_v2, 0.0 }
 0x19e   : > { %v1394_v9 = vpack.c.bf16 %v1038_v7, %v1037_v6 }
 0x1a0   : > { %1402 = vst [vmem:[#allocation8 + $0x38] sm:$0xff] %v1394_v9  }
 0x1a1 PF: > { %p2094_p4 = scmp.eq.s32.totalorder %s1238_s18, 1  ;;  %s1840_s10 = smov [#allocation8]  }
 0x1a2   : > { %s1129_s20 = sshll.u32 %s1840_s10, 4  ;;  %s1130_s20 = int_to_ptr.vmem [resolvable:$true] %s1129_s20 }
 0x1a3   : > { %s1746_s22 = scalar_lea.vmem %s1130_s20, 1024  ;;  %p1753_p0 = scmp.lt.s32.totalorder %s1130_s20, %s1130_s20 }
 0x1a4   : > { %p1747_p8 = scmp.ne.s32.totalorder %s1130_s20, %s1746_s22  ;;  %p1754_p10 = scmp.lt.s32.totalorder %s1746_s22, %s1746_s22 }
 0x1a6   : > { %p1748_p2 = pnand %p1747_p8, %p2094_p4  ;;  %p1755_p5 = por %p1754_p10, %p1753_p0 }
 0x1a8   : > { %p1749_p3 = pneg %p1748_p2 }
 0x1aa   : > { %p1756_p6 = pnand %p1755_p5, %p1749_p3 }
 0x1ac   : > { %1759 = shalt.err (!%p1756_p6)
}
 0x1ad   : > { %s1760_s18 = scalar_lea.hbm %s2141_s3, 1024 }
 0x1ae   : > { %p1761_p11 = scmp.ne.s32.totalorder %s2141_s3, %s1760_s18  ;;  %p1766_p7 = scmp.lt.u32.totalorder %s1760_s18, %s2141_s3 }
 0x1b0   : > { %p1762_p13 = pnand %p1761_p11, %p2094_p4 }
 0x1b2   : > { %p1763_p1 = pneg %p1762_p13 }
 0x1b4   : > { %p1768_p9 = pnand %p1766_p7, %p1763_p1 }
 0x1b6   : > { %1771 = shalt.err (!%p1768_p9)
}
 0x1b7   : > { %s1841_s12 = smov 64   ;;  %s1842_s21 = smov 4  }
 0x1b8   : > { %1536 = dma.vmem_to_hbm [thread:$0]  (%p2094_p4), %s1130_s20, 1024, %s2141_s3, [#allocation5], %s1841_s12, %s1841_s12, %s1842_s21  }
 0x1b9   : > { %1805 = dma.done.wait (%p2094_p4), [#allocation5], 1024  }
 0x1ba   : > { %1807 = vsyncadd (%p2094_p4), [#allocation5], 4294966272 }
 0x1bb PF: > { %s20_s17 = sadd.s32 1, %s1830_s17   ;;  %s2150_s12 = smov %s1814_s13 }
 0x1bc   : > { %p17_p12 = scmp.ge.s32.totalorder %s20_s17, 4   ;;  %s2151_s13 = smov %s1818_s14 }
 0x1bd   : > { %s2152_s14 = smov %s1914_s24  ;;  %s2153_s15 = smov %s1826_s16 }
 0x1be   : > { %s2154_s16 = smov %s2156_s19  ;;  %19 = sbr.rel (!%p17_p12) target bundleno = 7 (0x7), region = 94 }
 0x1c5   :  { %1145 = vsyncpa [#allocation4], 1 }
 0x1c6   :  { %1147 = vsyncpa [#allocation4 + $0x1], 1 }
 0x1c7   :  { %1148 = vsyncpa [#allocation7], 1 }
 0x1c8   :  { %1150 = vsyncpa [#allocation7 + $0x1], 1 }
 0x1c9   :  { %1151 = vsyncpa [#allocation5], 1 }
 0x1ca   :  { %1153 = vsyncpa [#allocation5 + $0x1], 1 }

</bundles_post_ra>
